<compile_context>
chip_gen: v6e
topology: v6e:2x2x1
jax: 0.10.0
libtpu: 0.0.40
codegen_flags: <defaults>
</compile_context>

<pallas_src>
import functools

import jax
import jax.numpy as jnp
from jax.experimental import pallas as pl
from jax.experimental.pallas import tpu as pltpu

_LANE = 128
_SUB = 8
_MIN_TILE = _SUB * _LANE  # 1024


def _dice_kernel(p_ref, t_ref, o_ref,
                 s_sig, s_p, s_t, s_sigt, s_pt, s_max, s_min,
                 *, smooth, rows, block_rows, sig_pad_corr, needs_mask):
    i = pl.program_id(0)

    @pl.when(i == 0)
    def _init():
        z = jnp.zeros((_SUB, _LANE), jnp.float32)
        s_sig[...] = z
        s_p[...] = z
        s_t[...] = z
        s_sigt[...] = z
        s_pt[...] = z
        # Zero init is safe for max/min: the branch only tests max>1 / min<0,
        # and 0 can never flip either test (zeros are also what padding adds).
        s_max[...] = z
        s_min[...] = z

    # Cast after the tile lands in VMEM (inputs stay native dtype in HBM).
    p = p_ref[...].astype(jnp.float32)
    t = t_ref[...].astype(jnp.float32)

    if needs_mask:
        # Last grid step covers rows beyond the real array -> zero the
        # garbage region.  Only traced when rows % block_rows != 0.
        rid = (i * block_rows
               + jax.lax.broadcasted_iota(jnp.int32, (block_rows, _LANE), 0))
        valid = rid < rows
        p = jnp.where(valid, p, 0.0)
        t = jnp.where(valid, t, 0.0)

    p_sig = jax.nn.sigmoid(p)

    # Fold (block_rows, 128) -> (8, 128): elementwise vreg adds (VPU only),
    # no cross-lane traffic in the steady-state loop.
    k = block_rows // _SUB
    pr = p.reshape(k, _SUB, _LANE)
    tr = t.reshape(k, _SUB, _LANE)
    sr = p_sig.reshape(k, _SUB, _LANE)

    s_sig[...] += jnp.sum(sr, axis=0)
    s_p[...] += jnp.sum(pr, axis=0)
    s_t[...] += jnp.sum(tr, axis=0)
    s_sigt[...] += jnp.sum(sr * tr, axis=0)
    s_pt[...] += jnp.sum(pr * tr, axis=0)
    s_max[...] = jnp.maximum(s_max[...], jnp.max(pr, axis=0))
    s_min[...] = jnp.minimum(s_min[...], jnp.min(pr, axis=0))

    @pl.when(i == pl.num_programs(0) - 1)
    def _finalize():
        # Single cross-lane/sublane reduction pass (XLU) for the whole loss.
        sum_sig = jnp.sum(s_sig[...], keepdims=True) - sig_pad_corr
        sum_p = jnp.sum(s_p[...], keepdims=True)
        sum_t = jnp.sum(s_t[...], keepdims=True)
        inter_sig = jnp.sum(s_sigt[...], keepdims=True)
        inter_raw = jnp.sum(s_pt[...], keepdims=True)
        p_max = jnp.max(s_max[...], keepdims=True)
        p_min = jnp.min(s_min[...], keepdims=True)

        use_sig = jnp.logical_or(p_max > 1.0, p_min < 0.0)
        inter = jnp.where(use_sig, inter_sig, inter_raw)
        p_sum = jnp.where(use_sig, sum_sig, sum_p)
        dice = (2.0 * inter + smooth) / (p_sum + sum_t + smooth)
        o_ref[...] = 1.0 - dice


def dice_loss(predictions, targets, smooth=1e-6, block_rows=4096):
    """Pallas implementation of DiceLoss.forward. Returns a scalar f32."""
    n = int(predictions.size)

    p = predictions.reshape(-1)   # metadata-only, native dtype
    t = targets.reshape(-1)

    pad = (-n) % _MIN_TILE
    if pad:
        # TODO(synk): only the tail needs padding; for n % 1024 == 0 (the
        # typical segmentation case, and the test below) this path is skipped
        # entirely and no HBM copies are made.
        p = jnp.pad(p, (0, pad))
        t = jnp.pad(t, (0, pad))

    rows = (n + pad) // _LANE                 # multiple of 8
    p2 = p.reshape(rows, _LANE)               # metadata-only
    t2 = t.reshape(rows, _LANE)

    block_rows = max(_SUB, (int(block_rows) // _SUB) * _SUB)
    block_rows = min(block_rows, rows)        # both multiples of 8
    grid_steps = pl.cdiv(rows, block_rows)
    total = grid_steps * block_rows * _LANE
    # Every synthetic zero element (explicit pad + masked garbage) adds
    # sigmoid(0) == 0.5 to the sigmoid-branch sum; remove it once at the end.
    sig_pad_corr = 0.5 * float(total - n)
    needs_mask = (rows % block_rows) != 0

    kernel = functools.partial(
        _dice_kernel,
        smooth=float(smooth),
        rows=rows,
        block_rows=block_rows,
        sig_pad_corr=sig_pad_corr,
        needs_mask=needs_mask,
    )

    tile_spec = pl.BlockSpec((block_rows, _LANE), lambda i: (i, 0))

    out = pl.pallas_call(
        kernel,
        out_shape=jax.ShapeDtypeStruct((1, 1), jnp.float32),
        grid_spec=pltpu.PrefetchScalarGridSpec(
            num_scalar_prefetch=0,
            grid=(grid_steps,),
            in_specs=[tile_spec, tile_spec],
            out_specs=pl.BlockSpec((1, 1), lambda i: (0, 0)),
            scratch_shapes=[pltpu.VMEM((_SUB, _LANE), jnp.float32)
                            for _ in range(7)],
        ),
        compiler_params=pltpu.CompilerParams(
            dimension_semantics=("arbitrary",)),
    )(p2, t2)
    return out[0, 0]


def _dice_loss_ref(predictions, targets, smooth=1e-6):
    p = predictions.astype(jnp.float32)
    t = targets.astype(jnp.float32)
    use_sig = jnp.logical_or(p.max() > 1.0, p.min() < 0.0)
    p = jnp.where(use_sig, jax.nn.sigmoid(p), p)
    p = p.reshape(-1)
    t = t.reshape(-1)
    inter = jnp.sum(p * t)
    dice = (2.0 * inter + smooth) / (p.sum() + t.sum() + smooth)
    return 1.0 - dice


if __name__ == "__main__":
    key = jax.random.PRNGKey(0)
    k1, k2 = jax.random.split(key)

    # predictions: raw logits (outside [0,1] -> sigmoid branch taken, as in PyTorch)
    predictions = jax.random.normal(k1, (2, 4, 16, 16), dtype=jnp.float32)
    # targets: binary masks
    targets = (jax.random.uniform(k2, (2, 4, 16, 16)) > 0.5).astype(jnp.float32)

    loss = dice_loss(predictions, targets)
    loss = jax.block_until_ready(loss)

    ref = _dice_loss_ref(predictions, targets)
    assert jnp.allclose(loss, ref, atol=1e-5, rtol=1e-5), (loss, ref)

    print("KERNEL_OK")
</pallas_src>

<mosaic_0001>
module attributes {stable_mosaic.version = 11 : i64} {
  func.func @_dice_kernel(%arg0: i32, %arg1: memref<16x128xf32, #tpu.memory_space<vmem>>, %arg2: memref<16x128xf32, #tpu.memory_space<vmem>>, %arg3: memref<1x1xf32, #tpu.memory_space<vmem>>, %arg4: memref<8x128xf32, #tpu.memory_space<vmem>>, %arg5: memref<8x128xf32, #tpu.memory_space<vmem>>, %arg6: memref<8x128xf32, #tpu.memory_space<vmem>>, %arg7: memref<8x128xf32, #tpu.memory_space<vmem>>, %arg8: memref<8x128xf32, #tpu.memory_space<vmem>>, %arg9: memref<8x128xf32, #tpu.memory_space<vmem>>, %arg10: memref<8x128xf32, #tpu.memory_space<vmem>>) attributes {dimension_semantics = [#tpu.dimension_semantics<arbitrary>], iteration_bounds = array<i64: 1>, scalar_prefetch = 0 : i64, scratch_operands = 7 : i64, tpu.core_type = #tpu.core_type<tc>, window_params = [{transform_indices = @transform_0, window_bounds = array<i64: 16, 128>}, {transform_indices = @transform_1, window_bounds = array<i64: 16, 128>}, {pipeline_mode = #tpu.pipeline_mode<synchronous>, transform_indices = @transform_2, window_bounds = array<i64: 1, 1>}]} {
    %c0_i32 = arith.constant 0 : i32
    %0 = arith.cmpi eq, %arg0, %c0_i32 : i32
    %1 = arith.extui %0 : i1 to i32
    %c0_i32_0 = arith.constant 0 : i32
    %2 = arith.cmpi ne, %1, %c0_i32_0 : i32
    scf.if %2 {
      %cst_41 = arith.constant 0.000000e+00 : f32
      %46 = vector.broadcast %cst_41 : f32 to vector<8x128xf32>
      %c0_42 = arith.constant 0 : index
      %c0_43 = arith.constant 0 : index
      %47 = vector.load %arg4[%c0_42, %c0_43] : memref<8x128xf32, #tpu.memory_space<vmem>>, vector<8x128xf32>
      tpu.vector_store %arg4[%c0_42, %c0_43], %46 {strides = array<i32>} : memref<8x128xf32, #tpu.memory_space<vmem>>, vector<8x128xf32>,
      %c0_44 = arith.constant 0 : index
      %c0_45 = arith.constant 0 : index
      %48 = vector.load %arg5[%c0_44, %c0_45] : memref<8x128xf32, #tpu.memory_space<vmem>>, vector<8x128xf32>
      tpu.vector_store %arg5[%c0_44, %c0_45], %46 {strides = array<i32>} : memref<8x128xf32, #tpu.memory_space<vmem>>, vector<8x128xf32>,
      %c0_46 = arith.constant 0 : index
      %c0_47 = arith.constant 0 : index
      %49 = vector.load %arg6[%c0_46, %c0_47] : memref<8x128xf32, #tpu.memory_space<vmem>>, vector<8x128xf32>
      tpu.vector_store %arg6[%c0_46, %c0_47], %46 {strides = array<i32>} : memref<8x128xf32, #tpu.memory_space<vmem>>, vector<8x128xf32>,
      %c0_48 = arith.constant 0 : index
      %c0_49 = arith.constant 0 : index
      %50 = vector.load %arg7[%c0_48, %c0_49] : memref<8x128xf32, #tpu.memory_space<vmem>>, vector<8x128xf32>
      tpu.vector_store %arg7[%c0_48, %c0_49], %46 {strides = array<i32>} : memref<8x128xf32, #tpu.memory_space<vmem>>, vector<8x128xf32>,
      %c0_50 = arith.constant 0 : index
      %c0_51 = arith.constant 0 : index
      %51 = vector.load %arg8[%c0_50, %c0_51] : memref<8x128xf32, #tpu.memory_space<vmem>>, vector<8x128xf32>
      tpu.vector_store %arg8[%c0_50, %c0_51], %46 {strides = array<i32>} : memref<8x128xf32, #tpu.memory_space<vmem>>, vector<8x128xf32>,
      %c0_52 = arith.constant 0 : index
      %c0_53 = arith.constant 0 : index
      %52 = vector.load %arg9[%c0_52, %c0_53] : memref<8x128xf32, #tpu.memory_space<vmem>>, vector<8x128xf32>
      tpu.vector_store %arg9[%c0_52, %c0_53], %46 {strides = array<i32>} : memref<8x128xf32, #tpu.memory_space<vmem>>, vector<8x128xf32>,
      %c0_54 = arith.constant 0 : index
      %c0_55 = arith.constant 0 : index
      %53 = vector.load %arg10[%c0_54, %c0_55] : memref<8x128xf32, #tpu.memory_space<vmem>>, vector<8x128xf32>
      tpu.vector_store %arg10[%c0_54, %c0_55], %46 {strides = array<i32>} : memref<8x128xf32, #tpu.memory_space<vmem>>, vector<8x128xf32>,
    } else {
    }
    %c0 = arith.constant 0 : index
    %c0_1 = arith.constant 0 : index
    %3 = vector.load %arg1[%c0, %c0_1] : memref<16x128xf32, #tpu.memory_space<vmem>>, vector<16x128xf32>
    %c0_2 = arith.constant 0 : index
    %c0_3 = arith.constant 0 : index
    %4 = vector.load %arg2[%c0_2, %c0_3] : memref<16x128xf32, #tpu.memory_space<vmem>>, vector<16x128xf32>
    %5 = arith.negf %3 : vector<16x128xf32>
    %6 = math.exp %5 : vector<16x128xf32>
    %cst = arith.constant 1.000000e+00 : f32
    %7 = vector.broadcast %cst : f32 to vector<16x128xf32>
    %8 = arith.addf %7, %6 : vector<16x128xf32>
    %9 = arith.divf %7, %8 : vector<16x128xf32>
    %10 = vector.shape_cast %3 : vector<16x128xf32> to vector<2x8x128xf32>
    %11 = vector.shape_cast %4 : vector<16x128xf32> to vector<2x8x128xf32>
    %12 = vector.shape_cast %9 : vector<16x128xf32> to vector<2x8x128xf32>
    %c0_4 = arith.constant 0 : index
    %c0_5 = arith.constant 0 : index
    %13 = vector.load %arg4[%c0_4, %c0_5] : memref<8x128xf32, #tpu.memory_space<vmem>>, vector<8x128xf32>
    %cst_6 = arith.constant dense<0.000000e+00> : vector<8x128xf32>
    %14 = vector.multi_reduction <add>, %12, %cst_6 [0] : vector<2x8x128xf32> to vector<8x128xf32>
    %15 = arith.addf %13, %14 : vector<8x128xf32>
    %c0_7 = arith.constant 0 : index
    %c0_8 = arith.constant 0 : index
    %16 = vector.load %arg4[%c0_7, %c0_8] : memref<8x128xf32, #tpu.memory_space<vmem>>, vector<8x128xf32>
    tpu.vector_store %arg4[%c0_7, %c0_8], %15 {strides = array<i32>} : memref<8x128xf32, #tpu.memory_space<vmem>>, vector<8x128xf32>,
    %c0_9 = arith.constant 0 : index
    %c0_10 = arith.constant 0 : index
    %17 = vector.load %arg5[%c0_9, %c0_10] : memref<8x128xf32, #tpu.memory_space<vmem>>, vector<8x128xf32>
    %cst_11 = arith.constant dense<0.000000e+00> : vector<8x128xf32>
    %18 = vector.multi_reduction <add>, %10, %cst_11 [0] : vector<2x8x128xf32> to vector<8x128xf32>
    %19 = arith.addf %17, %18 : vector<8x128xf32>
    %c0_12 = arith.constant 0 : index
    %c0_13 = arith.constant 0 : index
    %20 = vector.load %arg5[%c0_12, %c0_13] : memref<8x128xf32, #tpu.memory_space<vmem>>, vector<8x128xf32>
    tpu.vector_store %arg5[%c0_12, %c0_13], %19 {strides = array<i32>} : memref<8x128xf32, #tpu.memory_space<vmem>>, vector<8x128xf32>,
    %c0_14 = arith.constant 0 : index
    %c0_15 = arith.constant 0 : index
    %21 = vector.load %arg6[%c0_14, %c0_15] : memref<8x128xf32, #tpu.memory_space<vmem>>, vector<8x128xf32>
    %cst_16 = arith.constant dense<0.000000e+00> : vector<8x128xf32>
    %22 = vector.multi_reduction <add>, %11, %cst_16 [0] : vector<2x8x128xf32> to vector<8x128xf32>
    %23 = arith.addf %21, %22 : vector<8x128xf32>
    %c0_17 = arith.constant 0 : index
    %c0_18 = arith.constant 0 : index
    %24 = vector.load %arg6[%c0_17, %c0_18] : memref<8x128xf32, #tpu.memory_space<vmem>>, vector<8x128xf32>
    tpu.vector_store %arg6[%c0_17, %c0_18], %23 {strides = array<i32>} : memref<8x128xf32, #tpu.memory_space<vmem>>, vector<8x128xf32>,
    %c0_19 = arith.constant 0 : index
    %c0_20 = arith.constant 0 : index
    %25 = vector.load %arg7[%c0_19, %c0_20] : memref<8x128xf32, #tpu.memory_space<vmem>>, vector<8x128xf32>
    %26 = arith.mulf %12, %11 : vector<2x8x128xf32>
    %cst_21 = arith.constant dense<0.000000e+00> : vector<8x128xf32>
    %27 = vector.multi_reduction <add>, %26, %cst_21 [0] : vector<2x8x128xf32> to vector<8x128xf32>
    %28 = arith.addf %25, %27 : vector<8x128xf32>
    %c0_22 = arith.constant 0 : index
    %c0_23 = arith.constant 0 : index
    %29 = vector.load %arg7[%c0_22, %c0_23] : memref<8x128xf32, #tpu.memory_space<vmem>>, vector<8x128xf32>
    tpu.vector_store %arg7[%c0_22, %c0_23], %28 {strides = array<i32>} : memref<8x128xf32, #tpu.memory_space<vmem>>, vector<8x128xf32>,
    %c0_24 = arith.constant 0 : index
    %c0_25 = arith.constant 0 : index
    %30 = vector.load %arg8[%c0_24, %c0_25] : memref<8x128xf32, #tpu.memory_space<vmem>>, vector<8x128xf32>
    %31 = arith.mulf %10, %11 : vector<2x8x128xf32>
    %cst_26 = arith.constant dense<0.000000e+00> : vector<8x128xf32>
    %32 = vector.multi_reduction <add>, %31, %cst_26 [0] : vector<2x8x128xf32> to vector<8x128xf32>
    %33 = arith.addf %30, %32 : vector<8x128xf32>
    %c0_27 = arith.constant 0 : index
    %c0_28 = arith.constant 0 : index
    %34 = vector.load %arg8[%c0_27, %c0_28] : memref<8x128xf32, #tpu.memory_space<vmem>>, vector<8x128xf32>
    tpu.vector_store %arg8[%c0_27, %c0_28], %33 {strides = array<i32>} : memref<8x128xf32, #tpu.memory_space<vmem>>, vector<8x128xf32>,
    %c0_29 = arith.constant 0 : index
    %c0_30 = arith.constant 0 : index
    %35 = vector.load %arg9[%c0_29, %c0_30] : memref<8x128xf32, #tpu.memory_space<vmem>>, vector<8x128xf32>
    %cst_31 = arith.constant dense<0xFF800000> : vector<8x128xf32>
    %36 = vector.multi_reduction <maximumf>, %10, %cst_31 [0] : vector<2x8x128xf32> to vector<8x128xf32>
    %37 = arith.maximumf %35, %36 : vector<8x128xf32>
    %c0_32 = arith.constant 0 : index
    %c0_33 = arith.constant 0 : index
    %38 = vector.load %arg9[%c0_32, %c0_33] : memref<8x128xf32, #tpu.memory_space<vmem>>, vector<8x128xf32>
    tpu.vector_store %arg9[%c0_32, %c0_33], %37 {strides = array<i32>} : memref<8x128xf32, #tpu.memory_space<vmem>>, vector<8x128xf32>,
    %c0_34 = arith.constant 0 : index
    %c0_35 = arith.constant 0 : index
    %39 = vector.load %arg10[%c0_34, %c0_35] : memref<8x128xf32, #tpu.memory_space<vmem>>, vector<8x128xf32>
    %cst_36 = arith.constant dense<0x7F800000> : vector<8x128xf32>
    %40 = vector.multi_reduction <minimumf>, %10, %cst_36 [0] : vector<2x8x128xf32> to vector<8x128xf32>
    %41 = arith.minimumf %39, %40 : vector<8x128xf32>
    %c0_37 = arith.constant 0 : index
    %c0_38 = arith.constant 0 : index
    %42 = vector.load %arg10[%c0_37, %c0_38] : memref<8x128xf32, #tpu.memory_space<vmem>>, vector<8x128xf32>
    tpu.vector_store %arg10[%c0_37, %c0_38], %41 {strides = array<i32>} : memref<8x128xf32, #tpu.memory_space<vmem>>, vector<8x128xf32>,
    %c0_i32_39 = arith.constant 0 : i32
    %43 = arith.cmpi eq, %arg0, %c0_i32_39 : i32
    %44 = arith.extui %43 : i1 to i32
    %c0_i32_40 = arith.constant 0 : i32
    %45 = arith.cmpi ne, %44, %c0_i32_40 : i32
    scf.if %45 {
      %c0_41 = arith.constant 0 : index
      %c0_42 = arith.constant 0 : index
      %46 = vector.load %arg4[%c0_41, %c0_42] : memref<8x128xf32, #tpu.memory_space<vmem>>, vector<8x128xf32>
      %47 = vector.shape_cast %46 : vector<8x128xf32> to vector<1x8x128xf32>
      %cst_43 = arith.constant dense<0.000000e+00> : vector<1xf32>
      %48 = vector.multi_reduction <add>, %47, %cst_43 [1, 2] : vector<1x8x128xf32> to vector<1xf32>
      %49 = vector.shape_cast %48 : vector<1xf32> to vector<1x1x1xf32>
      %50 = vector.extract %49[0, 0, 0] : f32 from vector<1x1x1xf32>
      %51 = vector.broadcast %50 : f32 to vector<1x1xf32>
      %cst_44 = arith.constant 0.000000e+00 : f32
      %52 = vector.broadcast %cst_44 : f32 to vector<1x1xf32>
      %53 = arith.subf %51, %52 : vector<1x1xf32>
      %c0_45 = arith.constant 0 : index
      %c0_46 = arith.constant 0 : index
      %54 = vector.load %arg5[%c0_45, %c0_46] : memref<8x128xf32, #tpu.memory_space<vmem>>, vector<8x128xf32>
      %55 = vector.shape_cast %54 : vector<8x128xf32> to vector<1x8x128xf32>
      %cst_47 = arith.constant dense<0.000000e+00> : vector<1xf32>
      %56 = vector.multi_reduction <add>, %55, %cst_47 [1, 2] : vector<1x8x128xf32> to vector<1xf32>
      %57 = vector.shape_cast %56 : vector<1xf32> to vector<1x1x1xf32>
      %58 = vector.extract %57[0, 0, 0] : f32 from vector<1x1x1xf32>
      %59 = vector.broadcast %58 : f32 to vector<1x1xf32>
      %c0_48 = arith.constant 0 : index
      %c0_49 = arith.constant 0 : index
      %60 = vector.load %arg6[%c0_48, %c0_49] : memref<8x128xf32, #tpu.memory_space<vmem>>, vector<8x128xf32>
      %61 = vector.shape_cast %60 : vector<8x128xf32> to vector<1x8x128xf32>
      %cst_50 = arith.constant dense<0.000000e+00> : vector<1xf32>
      %62 = vector.multi_reduction <add>, %61, %cst_50 [1, 2] : vector<1x8x128xf32> to vector<1xf32>
      %63 = vector.shape_cast %62 : vector<1xf32> to vector<1x1x1xf32>
      %64 = vector.extract %63[0, 0, 0] : f32 from vector<1x1x1xf32>
      %65 = vector.broadcast %64 : f32 to vector<1x1xf32>
      %c0_51 = arith.constant 0 : index
      %c0_52 = arith.constant 0 : index
      %66 = vector.load %arg7[%c0_51, %c0_52] : memref<8x128xf32, #tpu.memory_space<vmem>>, vector<8x128xf32>
      %67 = vector.shape_cast %66 : vector<8x128xf32> to vector<1x8x128xf32>
      %cst_53 = arith.constant dense<0.000000e+00> : vector<1xf32>
      %68 = vector.multi_reduction <add>, %67, %cst_53 [1, 2] : vector<1x8x128xf32> to vector<1xf32>
      %69 = vector.shape_cast %68 : vector<1xf32> to vector<1x1x1xf32>
      %70 = vector.extract %69[0, 0, 0] : f32 from vector<1x1x1xf32>
      %71 = vector.broadcast %70 : f32 to vector<1x1xf32>
      %c0_54 = arith.constant 0 : index
      %c0_55 = arith.constant 0 : index
      %72 = vector.load %arg8[%c0_54, %c0_55] : memref<8x128xf32, #tpu.memory_space<vmem>>, vector<8x128xf32>
      %73 = vector.shape_cast %72 : vector<8x128xf32> to vector<1x8x128xf32>
      %cst_56 = arith.constant dense<0.000000e+00> : vector<1xf32>
      %74 = vector.multi_reduction <add>, %73, %cst_56 [1, 2] : vector<1x8x128xf32> to vector<1xf32>
      %75 = vector.shape_cast %74 : vector<1xf32> to vector<1x1x1xf32>
      %76 = vector.extract %75[0, 0, 0] : f32 from vector<1x1x1xf32>
      %77 = vector.broadcast %76 : f32 to vector<1x1xf32>
      %c0_57 = arith.constant 0 : index
      %c0_58 = arith.constant 0 : index
      %78 = vector.load %arg9[%c0_57, %c0_58] : memref<8x128xf32, #tpu.memory_space<vmem>>, vector<8x128xf32>
      %79 = vector.shape_cast %78 : vector<8x128xf32> to vector<1x8x128xf32>
      %cst_59 = arith.constant dense<0xFF800000> : vector<1xf32>
      %80 = vector.multi_reduction <maximumf>, %79, %cst_59 [1, 2] : vector<1x8x128xf32> to vector<1xf32>
      %81 = vector.shape_cast %80 : vector<1xf32> to vector<1x1x1xf32>
      %82 = vector.extract %81[0, 0, 0] : f32 from vector<1x1x1xf32>
      %83 = vector.broadcast %82 : f32 to vector<1x1xf32>
      %c0_60 = arith.constant 0 : index
      %c0_61 = arith.constant 0 : index
      %84 = vector.load %arg10[%c0_60, %c0_61] : memref<8x128xf32, #tpu.memory_space<vmem>>, vector<8x128xf32>
      %85 = vector.shape_cast %84 : vector<8x128xf32> to vector<1x8x128xf32>
      %cst_62 = arith.constant dense<0x7F800000> : vector<1xf32>
      %86 = vector.multi_reduction <minimumf>, %85, %cst_62 [1, 2] : vector<1x8x128xf32> to vector<1xf32>
      %87 = vector.shape_cast %86 : vector<1xf32> to vector<1x1x1xf32>
      %88 = vector.extract %87[0, 0, 0] : f32 from vector<1x1x1xf32>
      %89 = vector.broadcast %88 : f32 to vector<1x1xf32>
      %cst_63 = arith.constant 1.000000e+00 : f32
      %90 = vector.broadcast %cst_63 : f32 to vector<1x1xf32>
      %91 = arith.cmpf ogt, %83, %90 : vector<1x1xf32>
      %cst_64 = arith.constant 0.000000e+00 : f32
      %92 = vector.broadcast %cst_64 : f32 to vector<1x1xf32>
      %93 = arith.cmpf olt, %89, %92 : vector<1x1xf32>
      %94 = arith.ori %91, %93 : vector<1x1xi1>
      %95 = arith.select %94, %71, %77 : vector<1x1xi1>, vector<1x1xf32>
      %96 = arith.select %94, %53, %59 : vector<1x1xi1>, vector<1x1xf32>
      %cst_65 = arith.constant 2.000000e+00 : f32
      %97 = vector.broadcast %cst_65 : f32 to vector<1x1xf32>
      %98 = arith.mulf %97, %95 : vector<1x1xf32>
      %cst_66 = arith.constant 9.99999997E-7 : f32
      %99 = vector.broadcast %cst_66 : f32 to vector<1x1xf32>
      %100 = arith.addf %98, %99 : vector<1x1xf32>
      %101 = arith.addf %96, %65 : vector<1x1xf32>
      %cst_67 = arith.constant 9.99999997E-7 : f32
      %102 = vector.broadcast %cst_67 : f32 to vector<1x1xf32>
      %103 = arith.addf %101, %102 : vector<1x1xf32>
      %104 = arith.divf %100, %103 : vector<1x1xf32>
      %cst_68 = arith.constant 1.000000e+00 : f32
      %105 = vector.broadcast %cst_68 : f32 to vector<1x1xf32>
      %106 = arith.subf %105, %104 : vector<1x1xf32>
      %c0_69 = arith.constant 0 : index
      %c0_70 = arith.constant 0 : index
      %107 = vector.load %arg3[%c0_69, %c0_70] : memref<1x1xf32, #tpu.memory_space<vmem>>, vector<1x1xf32>
      tpu.vector_store %arg3[%c0_69, %c0_70], %106 {strides = array<i32>} : memref<1x1xf32, #tpu.memory_space<vmem>>, vector<1x1xf32>,
    } else {
    }
    return
  }
  func.func @transform_0(%arg0: i32) -> (i32, i32) {
    %c0_i32 = arith.constant 0 : i32
    %c0_i32_0 = arith.constant 0 : i32
    return %arg0, %c0_i32 : i32, i32
  }
  func.func @transform_1(%arg0: i32) -> (i32, i32) {
    %c0_i32 = arith.constant 0 : i32
    %c0_i32_0 = arith.constant 0 : i32
    return %arg0, %c0_i32 : i32, i32
  }
  func.func @transform_2(%arg0: i32) -> (i32, i32) {
    %c0_i32 = arith.constant 0 : i32
    %c0_i32_0 = arith.constant 0 : i32
    %c0_i32_1 = arith.constant 0 : i32
    return %c0_i32, %c0_i32_0 : i32, i32
  }
}

</mosaic_0001>

<bundles_post_ra>
// kernel: tpu_custom_call.1
= control target key start
LH: loop header
LB: loop body
LE: loop exit
PB: predicated region body
PF: predicated region fallthrough
CT: control target
= control target key end

     0   :  { %7 = vsyncpa [#allocation10], 0  ;;  %s335_s0 = inlined_call_operand.hbm [shape: f32[16,128], index: 0, kind: input, shape index: {}]   ;;  %s336_s1 = inlined_call_operand.hbm [shape: f32[16,128], index: 1, kind: input, shape index: {}]   ;;  %s337_s2 = inlined_call_operand.hbm [shape: f32[1,1], index: 2, kind: output, shape index: {}]  }
   0x1   :  { %8 = vsyncpa [#allocation13], 0 }
   0x2   :  { %9 = vsyncpa [#allocation11], 0  ;;  %s306_s9 = smov [#allocation9]  }
   0x3   :  { %s15_s10 = sshll.u32 %s306_s9, 4  ;;  %s16_s10 = int_to_ptr.vmem [resolvable:$true] %s15_s10 }
   0x4   :  { %s248_s11 = scalar_lea.vmem %s16_s10, 256  ;;  %p253_p1 = scmp.lt.s32.totalorder %s16_s10, %s16_s10 }
   0x5   :  { %p249_p0 = scmp.ne.s32.totalorder %s16_s10, %s248_s11  ;;  %p254_p2 = scmp.lt.s32.totalorder %s248_s11, %s248_s11 }
   0x7   :  { %p255_p3 = por %p254_p2, %p253_p1 }
   0x9   :  { %p256_p4 = pnand %p255_p3, %p249_p0 }
   0xb   :  { %259 = shalt.err (!%p256_p4)
}
   0xc   :  { %s307_s12 = smov 128   ;;  %s308_s13 = smov 8  }
   0xd   :  { %21 = dma.hbm_to_vmem [thread:$0]  %s335_s0, 256, %s16_s10, [#allocation10], %s307_s12, %s307_s12, %s308_s13  }
   0xe   :  { %s309_s16 = smov [#allocation12]  }
   0xf   :  { %s27_s17 = sshll.u32 %s309_s16, 4  ;;  %s28_s17 = int_to_ptr.vmem [resolvable:$true] %s27_s17 }
  0x10   :  { %s268_s18 = scalar_lea.vmem %s28_s17, 256  ;;  %p273_p6 = scmp.lt.s32.totalorder %s28_s17, %s28_s17 }
  0x11   :  { %p269_p5 = scmp.ne.s32.totalorder %s28_s17, %s268_s18  ;;  %p274_p7 = scmp.lt.s32.totalorder %s268_s18, %s268_s18 }
  0x13   :  { %p275_p8 = por %p274_p7, %p273_p6 }
  0x15   :  { %p276_p9 = pnand %p275_p8, %p269_p5 }
  0x17   :  { %279 = shalt.err (!%p276_p9)
}
  0x18   :  { %33 = dma.hbm_to_vmem [thread:$0]  %s336_s1, 256, %s28_s17, [#allocation13], %s307_s12, %s307_s12, %s308_s13  }
  0x19   :  { %300 = dma.done.wait [#allocation10], 256  }
  0x1a   :  { %301 = vsyncadd [#allocation10], 4294967040 }
  0x1b   :  { %302 = dma.done.wait [#allocation13], 256  }
  0x1c   :  { %303 = vsyncadd [#allocation13], 4294967040  ;;  %v51_v0 = vld [vmem:[#allocation9] sm:$0xff]  ;;  %v52_v1 = vld [vmem:[#allocation9 + $0x8] sm:$0xff]  ;;  %s310_s26 = smov [#allocation14]   ;;  %vm191_vm3 = vcmask 0  }
  0x1d   :  { %v53_v2 = vld [vmem:[#allocation12] sm:$0xff]  ;;  %v210_v3 = vmul.f32 -1.442695, %v52_v1  ;;  %v72_v4 = vadd.f32 %v52_v1, %v51_v0  ;;  %v209_v5 = vmul.f32 -1.442695, %v51_v0  ;;  %v54_v6 = vld [vmem:[#allocation12 + $0x8] sm:$0xff]  ;;  %v96_v16 = vmin.f32 %v51_v0, %v52_v1 }
  0x1e   :  { %v86_v7 = vmul.f32 %v53_v2, %v51_v0  ;;  %v76_v8 = vadd.f32 %v54_v6, %v53_v2  ;;  %v87_v9 = vmul.f32 %v54_v6, %v52_v1  ;;  %v92_v21 = vmax.f32 %v51_v0, %v52_v1  ;;  %s199_s27 = sshll.u32 %s310_s26, 4  ;;  %s200_s27 = int_to_ptr.vmem [resolvable:$true] %s199_s27 }
  0x1f   :  { %230 = vpow2.f32 %v210_v3  ;;  %114 = vadd.xlane.f32.xlu0 %v72_v4  ;;  %v97_v23 = vmin.f32 %v96_v16, 0.0  ;;  %s280_s28 = scalar_lea.vmem %s200_s27, 16  ;;  %s284_s29 = scalar_lea.vmem %s200_s27, 32 }
  0x20   :  { %232 = vpow2.f32 %v209_v5  ;;  %125 = vadd.xlane.f32.xlu1 %v76_v8  ;;  %v88_v10 = vadd.f32 %v87_v9, %v86_v7  ;;  %v93_v24 = vmax.f32 %v92_v21, 0.0  ;;  %p281_p10 = scmp.ne.s32.totalorder %s200_s27, %s280_s28  ;;  %p285_p11 = scmp.lt.s32.totalorder %s200_s27, %s200_s27 }
  0x21   :  { %p286_p12 = scmp.lt.s32.totalorder %s284_s29, %s280_s28 }
  0x23   :  { %147 = vadd.xlane.f32.xlu0 %v88_v10  ;;  %p287_p13 = por %p286_p12, %p285_p11 }
  0x25   :  { %p288_p0 = pnand %p287_p13, %p281_p10 }
  0x2c   :  { %v231_v11 = vpop.eup %230 }
  0x2d   :  { %v233_v12 = vpop.eup %232  ;;  %v62_v13 = vadd.f32 1.0, %v231_v11 }
  0x2e   :  { %v61_v14 = vadd.f32 1.0, %v233_v12 }
  0x2f   :  { %234 = vrcp.f32 %v62_v13 }
  0x30   :  { %236 = vrcp.f32 %v61_v14 }
  0x3c   :  { %v235_v15 = vpop.eup %234 }
  0x3d   :  { %v237_v17 = vpop.eup %236  ;;  %v81_v18 = vmul.f32 %v235_v15, %v54_v6 }
  0x3e   :  { %v68_v19 = vadd.f32 %v237_v17, %v235_v15  ;;  %v80_v20 = vmul.f32 %v237_v17, %v53_v2 }
  0x40   :  { %103 = vadd.xlane.f32.xlu0 %v68_v19  ;;  %v82_v22 = vadd.f32 %v81_v18, %v80_v20 }
  0x42   :  { %136 = vadd.xlane.f32.xlu1 %v82_v22 }
  0x44   :  { %169 = vmin.xlane.f32.xlu0 %v97_v23 }
  0x46   :  { %158 = vmax.xlane.f32.xlu1 %v93_v24 }
  0xa8   :  { %v115_v25 = vpop.xlane.xlu0 %114 }
  0xa9   :  { %v126_v26 = vpop.xlane.xlu1 %125  ;;  %v116_v28 = vrot.slane %v115_v25, 4 }
  0xaa   :  { %v127_v29 = vrot.slane %v126_v26, 4 }
  0xab   :  { %v117_v31 = vadd.f32 %v116_v28, %v115_v25 }
  0xac   :  { %v148_v27 = vpop.xlane.xlu0 %147  ;;  %v128_v32 = vadd.f32 %v127_v29, %v126_v26 }
  0xad   :  { %v149_v30 = vrot.slane %v148_v27, 4  ;;  %v118_v34 = vrot.slane %v117_v31, 2 }
  0xae   :  { %v129_v35 = vrot.slane %v128_v32, 2 }
  0xaf   :  { %v150_v33 = vadd.f32 %v149_v30, %v148_v27  ;;  %v119_v43 = vadd.f32 %v118_v34, %v117_v31 }
  0xb0   :  { %v130_v44 = vadd.f32 %v129_v35, %v128_v32 }
  0xb1   :  { %v151_v38 = vrot.slane %v150_v33, 2  ;;  %v120_v54 = vrot.slane %v119_v43, 1 }
  0xb2   :  { %v131_v55 = vrot.slane %v130_v44, 1 }
  0xb3   :  { %v152_v49 = vadd.f32 %v151_v38, %v150_v33  ;;  %v121_v1 = vadd.f32 %v120_v54, %v119_v43 }
  0xb4   :  { %v132_v3 = vadd.f32 %v131_v55, %v130_v44 }
  0xb5   :  { %v153_v60 = vrot.slane %v152_v49, 1 }
  0xb7   :  { %v154_v6 = vadd.f32 %v153_v60, %v152_v49 }
  0xc9   :  { %v104_v36 = vpop.xlane.xlu0 %103 }
  0xca   :  { %v105_v37 = vrot.slane %v104_v36, 4 }
  0xcb   :  { %v137_v39 = vpop.xlane.xlu1 %136 }
  0xcc   :  { %v106_v40 = vadd.f32 %v105_v37, %v104_v36  ;;  %v138_v41 = vrot.slane %v137_v39, 4 }
  0xcd   :  { %v170_v42 = vpop.xlane.xlu0 %169 }
  0xce   :  { %v107_v45 = vrot.slane %v106_v40, 2  ;;  %v139_v46 = vadd.f32 %v138_v41, %v137_v39  ;;  %v171_v47 = vrot.slane %v170_v42, 4 }
  0xcf   :  { %v159_v48 = vpop.xlane.xlu1 %158 }
  0xd0   :  { %v140_v50 = vrot.slane %v139_v46, 2  ;;  %v172_v51 = vmin.f32 %v170_v42, %v171_v47  ;;  %v160_v52 = vrot.slane %v159_v48, 4  ;;  %v108_v53 = vadd.f32 %v107_v45, %v106_v40 }
  0xd2   :  { %v173_v56 = vrot.slane %v172_v51, 2  ;;  %v161_v57 = vmax.f32 %v159_v48, %v160_v52  ;;  %v109_v58 = vrot.slane %v108_v53, 1  ;;  %v141_v59 = vadd.f32 %v140_v50, %v139_v46 }
  0xd4   :  { %v174_v61 = vmin.f32 %v172_v51, %v173_v56  ;;  %v162_v62 = vrot.slane %v161_v57, 2  ;;  %v110_v63 = vadd.f32 %v109_v58, %v108_v53  ;;  %v142_v0 = vrot.slane %v141_v59, 1 }
  0xd6   :  { %v163_v2 = vmax.f32 %v161_v57, %v162_v62  ;;  %211 = vpush %v110_v63  ;;  %v143_v4 = vadd.f32 %v142_v0, %v141_v59  ;;  %v175_v5 = vrot.slane %v174_v61, 1 }
  0xd7   :  { %213 = vpush %v121_v1 }
  0xd8   :  { %215 = vpush %v132_v3  ;;  %v164_v7 = vrot.slane %v163_v2, 1  ;;  %v176_v9 = vmin.f32 %v174_v61, %v175_v5 }
  0xd9   :  { %217 = vpush %v143_v4 }
  0xda   :  { %219 = vpush %v154_v6  ;;  %v165_v8 = vmax.f32 %v163_v2, %v164_v7 }
  0xdc   :  { %221 = vpush %v165_v8 }
  0xdd   :  { %223 = vpush %v176_v9 }
 0x107   :  { %s212_s0 = spop %211 }
 0x108   :  { %s214_s1 = spop %213  ;;  %v112_v12 = vstv %s212_s0 }
 0x109   :  { %s216_s21 = spop %215  ;;  %v123_v13 = vstv %s214_s1 }
 0x10a   :  { %s218_s22 = spop %217  ;;  %v134_v14 = vstv %s216_s21 }
 0x10b   :  { %s220_s23 = spop %219  ;;  %v145_v18 = vstv %s218_s22 }
 0x10c   :  { %v156_v19 = vstv %s220_s23 }
 0x10d   :  { %s222_s24 = spop %221 }
 0x10e   :  { %v167_v10 = vstv %s222_s24  ;;  %s224_s25 = spop %223 }
 0x10f   :  { %vm179_vm0 = vcmp.gt.f32.partialorder %v167_v10, 1.0  ;;  %v178_v11 = vstv %s224_s25 }
 0x110   :  { %vm180_vm1 = vcmp.lt.f32.partialorder %v178_v11, 0.0 }
 0x111   :  { %vm181_vm2 = vmor %vm179_vm0, %vm180_vm1 }
 0x112   :  { %v183_v15 = vsel %vm181_vm2, %v112_v12, %v123_v13  ;;  %v182_v20 = vsel %vm181_vm2, %v145_v18, %v156_v19 }
 0x113   :  { %v186_v16 = vadd.f32 %v183_v15, %v134_v14  ;;  %v184_v21 = vmul.f32 2.0, %v182_v20 }
 0x115   :  { %v187_v17 = vadd.f32 1e-06, %v186_v16  ;;  %v185_v22 = vadd.f32 1e-06, %v184_v21 }
 0x117   :  { %238 = vrcp.f32 %v187_v17 }
 0x124   :  { %v239_v23 = vpop.eup %238 }
 0x125   :  { %v189_v24 = vmul.f32 %v239_v23, %v185_v22 }
 0x127   :  { %v190_v25 = vsub.f32 1.0, %v189_v24 }
 0x129   :  { %192 = vst.msk [vmem:[#allocation14] sm:$0x1] %vm191_vm3, %v190_v25 }
 0x12a   :  { %291 = shalt.err (!%p288_p0)
}
 0x12b   :  { %202 = dma.vmem_to_hbm [thread:$0]  %s200_s27, 16, %s337_s2, [#allocation11]  }
 0x12c   :  { %304 = dma.done.wait [#allocation11], 16  }
 0x12d   :  { %305 = vsyncadd [#allocation11], 4294967280 }
 0x12e   :  { %206 = vsyncpa [#allocation10], 1 }
 0x12f   :  { %207 = vsyncpa [#allocation13], 1 }
 0x130   :  { %208 = vsyncpa [#allocation11], 1 }

</bundles_post_ra>
